<compile_context>
chip_gen: v7x
topology: tpu7x:2x2x1
jax: 0.10.0
libtpu: 0.0.40
codegen_flags: <defaults>
</compile_context>

<pallas_src>
import functools

import jax
import jax.numpy as jnp
from jax.experimental import pallas as pl
from jax.experimental.pallas import tpu as pltpu

_LANES = 128


def _project3d_kernel(p_ref, pts_ref, pix_ref, norm_ref, *, height, width, eps):
    """One grid step = one batch element x one (TR, 128) tile of points.

    p_ref   : SMEM (1, 3, 4)        -- P = (K @ T)[:3, :] for this batch elem
    pts_ref : VMEM (1, 4, TR, 128)  -- homogeneous 3D points, (rows, lanes)
    pix_ref : VMEM (1, 2, TR, 128)  -- unnormalized pixel coords (x, y)
    norm_ref: VMEM (1, 2, TR, 128)  -- coords normalized to [-1, 1]
    """
    # Load each point channel once (full (TR, 128) vreg-dense tiles).
    p0 = pts_ref[0, 0, :, :]
    p1 = pts_ref[0, 1, :, :]
    p2 = pts_ref[0, 2, :, :]
    p3 = pts_ref[0, 3, :, :]
    chans = (p0, p1, p2, p3)

    def cam_row(i):
        acc = p_ref[0, i, 0] * chans[0]
        for j in range(1, 4):
            acc = acc + p_ref[0, i, j] * chans[j]
        return acc

    x = cam_row(0)
    y = cam_row(1)
    z = cam_row(2)

    d = z + eps
    inv = pl.reciprocal(d, approx=True)       # EUP slot (free vs. VALU divide)
    inv = inv * (2.0 - d * inv)               # one Newton step -> ~f32 accuracy
    px = x * inv
    py = y * inv

    pix_ref[0, 0, :, :] = px
    pix_ref[0, 1, :, :] = py

    # (p / (dim-1) - 0.5) * 2  ==  p * (2/(dim-1)) - 1 ; constants folded at trace time.
    norm_ref[0, 0, :, :] = px * (2.0 / (width - 1)) - 1.0
    norm_ref[0, 1, :, :] = py * (2.0 / (height - 1)) - 1.0


def project_3d(points, K, T, *, height, width, eps=1e-7, row_tile=512):
    """JAX/Pallas equivalent of Project3D.forward.

    points: (B, 4, H*W) float32
    K, T  : (B, 4, 4)   float32
    returns (normalized_pix_coords, pix_coords), both (B, H, W, 2) float32.

    row_tile: rows (of 128 lanes) per grid step.  512 keeps the double-buffered
    working set ~4 MiB (safe on v5e's 16 MiB scoped VMEM and v7x's 64 MiB
    physical VMEM); raise it on v6e if desired.
    """
    B, four, N = points.shape
    assert four == 4 and N == height * width

    # Tiny 4x4 matmuls once in XLA; the kernel only sees P = (K @ T)[:3, :].
    P = jnp.matmul(K.astype(jnp.float32), T.astype(jnp.float32))[:, :3, :]

    # Re-layout N -> (rows, 128) so vector work uses full (8, 128) vregs.
    R = -(-N // _LANES)
    if R <= row_tile:
        TR, R_pad = R, R                       # single row-tile (block == full dim)
    else:
        TR = row_tile                          # multiple of 8
        R_pad = -(-R // TR) * TR
    N_pad = R_pad * _LANES

    pts = points.astype(jnp.float32)
    if N_pad != N:
        # Zero padding is benign: z=0 -> d=eps, px=py=0; padded region is sliced off.
        pts = jnp.pad(pts, ((0, 0), (0, 0), (0, N_pad - N)))
    pts = pts.reshape(B, 4, R_pad, _LANES)     # free, contiguous reshape

    kernel = functools.partial(_project3d_kernel,
                               height=height, width=width, eps=eps)

    pix4, norm4 = pl.pallas_call(
        kernel,
        out_shape=(
            jax.ShapeDtypeStruct((B, 2, R_pad, _LANES), jnp.float32),
            jax.ShapeDtypeStruct((B, 2, R_pad, _LANES), jnp.float32),
        ),
        grid_spec=pltpu.PrefetchScalarGridSpec(
            num_scalar_prefetch=0,
            grid=(B, R_pad // TR),
            in_specs=[
                pl.BlockSpec((1, 3, 4), lambda b, r: (b, 0, 0),
                             memory_space=pltpu.SMEM),
                pl.BlockSpec((1, 4, TR, _LANES), lambda b, r: (b, 0, r, 0)),
            ],
            out_specs=[
                pl.BlockSpec((1, 2, TR, _LANES), lambda b, r: (b, 0, r, 0)),
                pl.BlockSpec((1, 2, TR, _LANES), lambda b, r: (b, 0, r, 0)),
            ],
        ),
        compiler_params=pltpu.CompilerParams(
            dimension_semantics=("parallel", "parallel")),
    )(P, pts)

    # Layout glue required by the module's (B, H, W, 2) output contract.
    # TODO(synk): if the consumer (grid_sample) is also a Pallas kernel, keep
    # channel-major (B, 2, rows, 128) and fuse instead of this extra HBM pass.
    pix_flat = pix4.reshape(B, 2, N_pad)[:, :, :N]
    norm_flat = norm4.reshape(B, 2, N_pad)[:, :, :N]
    pix_coords = pix_flat.reshape(B, 2, height, width).transpose(0, 2, 3, 1)
    norm_coords = norm_flat.reshape(B, 2, height, width).transpose(0, 2, 3, 1)
    return norm_coords, pix_coords


def _reference(points, K, T, *, height, width, eps=1e-7):
    """Pure-JAX reference mirroring the PyTorch forward."""
    B = points.shape[0]
    P = jnp.matmul(K, T)[:, :3, :]
    cam = jnp.matmul(P, points)
    pix = cam[:, :2, :] / (cam[:, 2:3, :] + eps)
    pix = pix.reshape(B, 2, height, width).transpose(0, 2, 3, 1)
    norm = jnp.stack([pix[..., 0] / (width - 1),
                      pix[..., 1] / (height - 1)], axis=-1)
    norm = (norm - 0.5) * 2.0
    return norm, pix


if __name__ == "__main__":
    B, H, W = 2, 16, 16
    N = H * W

    key = jax.random.PRNGKey(0)
    k1, k2, k3 = jax.random.split(key, 3)

    # Homogeneous points with positive-ish depth so projection is well-behaved.
    pts = jax.random.uniform(k1, (B, 4, N), jnp.float32, 0.5, 1.5)
    pts = pts.at[:, 3, :].set(1.0)

    # Intrinsics / extrinsics: identity plus small deterministic perturbation.
    K = jnp.eye(4, dtype=jnp.float32)[None] + 0.05 * jax.random.normal(
        k2, (B, 4, 4), jnp.float32)
    T = jnp.eye(4, dtype=jnp.float32)[None] + 0.05 * jax.random.normal(
        k3, (B, 4, 4), jnp.float32)

    norm_out, pix_out = project_3d(pts, K, T, height=H, width=W)
    jax.block_until_ready((norm_out, pix_out))

    norm_ref, pix_ref = _reference(pts, K, T, height=H, width=W)
    assert norm_out.shape == (B, H, W, 2) and pix_out.shape == (B, H, W, 2)
    assert jnp.allclose(pix_out, pix_ref, rtol=1e-5, atol=1e-5)
    assert jnp.allclose(norm_out, norm_ref, rtol=1e-5, atol=1e-5)

    print("KERNEL_OK")
</pallas_src>

<mosaic_0001>
module attributes {stable_mosaic.version = 11 : i64} {
  func.func @_project3d_kernel(%arg0: i32, %arg1: i32, %arg2: memref<1x3x4xf32, #tpu.memory_space<smem>>, %arg3: memref<1x4x2x128xf32, #tpu.memory_space<vmem>>, %arg4: memref<1x2x2x128xf32, #tpu.memory_space<vmem>>, %arg5: memref<1x2x2x128xf32, #tpu.memory_space<vmem>>) attributes {dimension_semantics = [#tpu.dimension_semantics<parallel>, #tpu.dimension_semantics<parallel>], iteration_bounds = array<i64: 2, 1>, scalar_prefetch = 0 : i64, scratch_operands = 0 : i64, tpu.core_type = #tpu.core_type<tc>, window_params = [{transform_indices = @transform_0, window_bounds = array<i64: 1, 3, 4>}, {transform_indices = @transform_1, window_bounds = array<i64: 1, 4, 2, 128>}, {transform_indices = @transform_2, window_bounds = array<i64: 1, 2, 2, 128>}, {transform_indices = @transform_3, window_bounds = array<i64: 1, 2, 2, 128>}]} {
    %c0 = arith.constant 0 : index
    %c0_0 = arith.constant 0 : index
    %c0_1 = arith.constant 0 : index
    %c0_2 = arith.constant 0 : index
    %0 = vector.load %arg3[%c0, %c0_0, %c0_1, %c0_2] : memref<1x4x2x128xf32, #tpu.memory_space<vmem>>, vector<1x1x2x128xf32>
    %1 = vector.shape_cast %0 : vector<1x1x2x128xf32> to vector<2x128xf32>
    %c0_3 = arith.constant 0 : index
    %c1 = arith.constant 1 : index
    %c0_4 = arith.constant 0 : index
    %c0_5 = arith.constant 0 : index
    %2 = vector.load %arg3[%c0_3, %c1, %c0_4, %c0_5] : memref<1x4x2x128xf32, #tpu.memory_space<vmem>>, vector<1x1x2x128xf32>
    %3 = vector.shape_cast %2 : vector<1x1x2x128xf32> to vector<2x128xf32>
    %c0_6 = arith.constant 0 : index
    %c2 = arith.constant 2 : index
    %c0_7 = arith.constant 0 : index
    %c0_8 = arith.constant 0 : index
    %4 = vector.load %arg3[%c0_6, %c2, %c0_7, %c0_8] : memref<1x4x2x128xf32, #tpu.memory_space<vmem>>, vector<1x1x2x128xf32>
    %5 = vector.shape_cast %4 : vector<1x1x2x128xf32> to vector<2x128xf32>
    %c0_9 = arith.constant 0 : index
    %c3 = arith.constant 3 : index
    %c0_10 = arith.constant 0 : index
    %c0_11 = arith.constant 0 : index
    %6 = vector.load %arg3[%c0_9, %c3, %c0_10, %c0_11] : memref<1x4x2x128xf32, #tpu.memory_space<vmem>>, vector<1x1x2x128xf32>
    %7 = vector.shape_cast %6 : vector<1x1x2x128xf32> to vector<2x128xf32>
    %c0_12 = arith.constant 0 : index
    %c0_13 = arith.constant 0 : index
    %c0_14 = arith.constant 0 : index
    %8 = memref.load %arg2[%c0_12, %c0_13, %c0_14] : memref<1x3x4xf32, #tpu.memory_space<smem>>
    %9 = vector.broadcast %8 : f32 to vector<2x128xf32>
    %10 = arith.mulf %9, %1 : vector<2x128xf32>
    %c0_15 = arith.constant 0 : index
    %c0_16 = arith.constant 0 : index
    %c1_17 = arith.constant 1 : index
    %11 = memref.load %arg2[%c0_15, %c0_16, %c1_17] : memref<1x3x4xf32, #tpu.memory_space<smem>>
    %12 = vector.broadcast %11 : f32 to vector<2x128xf32>
    %13 = arith.mulf %12, %3 : vector<2x128xf32>
    %14 = arith.addf %10, %13 : vector<2x128xf32>
    %c0_18 = arith.constant 0 : index
    %c0_19 = arith.constant 0 : index
    %c2_20 = arith.constant 2 : index
    %15 = memref.load %arg2[%c0_18, %c0_19, %c2_20] : memref<1x3x4xf32, #tpu.memory_space<smem>>
    %16 = vector.broadcast %15 : f32 to vector<2x128xf32>
    %17 = arith.mulf %16, %5 : vector<2x128xf32>
    %18 = arith.addf %14, %17 : vector<2x128xf32>
    %c0_21 = arith.constant 0 : index
    %c0_22 = arith.constant 0 : index
    %c3_23 = arith.constant 3 : index
    %19 = memref.load %arg2[%c0_21, %c0_22, %c3_23] : memref<1x3x4xf32, #tpu.memory_space<smem>>
    %20 = vector.broadcast %19 : f32 to vector<2x128xf32>
    %21 = arith.mulf %20, %7 : vector<2x128xf32>
    %22 = arith.addf %18, %21 : vector<2x128xf32>
    %c0_24 = arith.constant 0 : index
    %c1_25 = arith.constant 1 : index
    %c0_26 = arith.constant 0 : index
    %23 = memref.load %arg2[%c0_24, %c1_25, %c0_26] : memref<1x3x4xf32, #tpu.memory_space<smem>>
    %24 = vector.broadcast %23 : f32 to vector<2x128xf32>
    %25 = arith.mulf %24, %1 : vector<2x128xf32>
    %c0_27 = arith.constant 0 : index
    %c1_28 = arith.constant 1 : index
    %c1_29 = arith.constant 1 : index
    %26 = memref.load %arg2[%c0_27, %c1_28, %c1_29] : memref<1x3x4xf32, #tpu.memory_space<smem>>
    %27 = vector.broadcast %26 : f32 to vector<2x128xf32>
    %28 = arith.mulf %27, %3 : vector<2x128xf32>
    %29 = arith.addf %25, %28 : vector<2x128xf32>
    %c0_30 = arith.constant 0 : index
    %c1_31 = arith.constant 1 : index
    %c2_32 = arith.constant 2 : index
    %30 = memref.load %arg2[%c0_30, %c1_31, %c2_32] : memref<1x3x4xf32, #tpu.memory_space<smem>>
    %31 = vector.broadcast %30 : f32 to vector<2x128xf32>
    %32 = arith.mulf %31, %5 : vector<2x128xf32>
    %33 = arith.addf %29, %32 : vector<2x128xf32>
    %c0_33 = arith.constant 0 : index
    %c1_34 = arith.constant 1 : index
    %c3_35 = arith.constant 3 : index
    %34 = memref.load %arg2[%c0_33, %c1_34, %c3_35] : memref<1x3x4xf32, #tpu.memory_space<smem>>
    %35 = vector.broadcast %34 : f32 to vector<2x128xf32>
    %36 = arith.mulf %35, %7 : vector<2x128xf32>
    %37 = arith.addf %33, %36 : vector<2x128xf32>
    %c0_36 = arith.constant 0 : index
    %c2_37 = arith.constant 2 : index
    %c0_38 = arith.constant 0 : index
    %38 = memref.load %arg2[%c0_36, %c2_37, %c0_38] : memref<1x3x4xf32, #tpu.memory_space<smem>>
    %39 = vector.broadcast %38 : f32 to vector<2x128xf32>
    %40 = arith.mulf %39, %1 : vector<2x128xf32>
    %c0_39 = arith.constant 0 : index
    %c2_40 = arith.constant 2 : index
    %c1_41 = arith.constant 1 : index
    %41 = memref.load %arg2[%c0_39, %c2_40, %c1_41] : memref<1x3x4xf32, #tpu.memory_space<smem>>
    %42 = vector.broadcast %41 : f32 to vector<2x128xf32>
    %43 = arith.mulf %42, %3 : vector<2x128xf32>
    %44 = arith.addf %40, %43 : vector<2x128xf32>
    %c0_42 = arith.constant 0 : index
    %c2_43 = arith.constant 2 : index
    %c2_44 = arith.constant 2 : index
    %45 = memref.load %arg2[%c0_42, %c2_43, %c2_44] : memref<1x3x4xf32, #tpu.memory_space<smem>>
    %46 = vector.broadcast %45 : f32 to vector<2x128xf32>
    %47 = arith.mulf %46, %5 : vector<2x128xf32>
    %48 = arith.addf %44, %47 : vector<2x128xf32>
    %c0_45 = arith.constant 0 : index
    %c2_46 = arith.constant 2 : index
    %c3_47 = arith.constant 3 : index
    %49 = memref.load %arg2[%c0_45, %c2_46, %c3_47] : memref<1x3x4xf32, #tpu.memory_space<smem>>
    %50 = vector.broadcast %49 : f32 to vector<2x128xf32>
    %51 = arith.mulf %50, %7 : vector<2x128xf32>
    %52 = arith.addf %48, %51 : vector<2x128xf32>
    %cst = arith.constant 1.000000e-07 : f32
    %53 = vector.broadcast %cst : f32 to vector<2x128xf32>
    %54 = arith.addf %52, %53 : vector<2x128xf32>
    %55 = tpu.reciprocal %54 {approx = true} : vector<2x128xf32> -> vector<2x128xf32>
    %56 = arith.mulf %54, %55 : vector<2x128xf32>
    %cst_48 = arith.constant 2.000000e+00 : f32
    %57 = vector.broadcast %cst_48 : f32 to vector<2x128xf32>
    %58 = arith.subf %57, %56 : vector<2x128xf32>
    %59 = arith.mulf %55, %58 : vector<2x128xf32>
    %60 = arith.mulf %22, %59 : vector<2x128xf32>
    %61 = arith.mulf %37, %59 : vector<2x128xf32>
    %c0_49 = arith.constant 0 : index
    %c0_50 = arith.constant 0 : index
    %c0_51 = arith.constant 0 : index
    %c0_52 = arith.constant 0 : index
    %62 = vector.load %arg4[%c0_49, %c0_50, %c0_51, %c0_52] : memref<1x2x2x128xf32, #tpu.memory_space<vmem>>, vector<1x1x2x128xf32>
    %63 = vector.shape_cast %62 : vector<1x1x2x128xf32> to vector<2x128xf32>
    %64 = vector.shape_cast %60 : vector<2x128xf32> to vector<1x1x2x128xf32>
    tpu.vector_store %arg4[%c0_49, %c0_50, %c0_51, %c0_52], %64 {strides = array<i32>} : memref<1x2x2x128xf32, #tpu.memory_space<vmem>>, vector<1x1x2x128xf32>,
    %c0_53 = arith.constant 0 : index
    %c1_54 = arith.constant 1 : index
    %c0_55 = arith.constant 0 : index
    %c0_56 = arith.constant 0 : index
    %65 = vector.load %arg4[%c0_53, %c1_54, %c0_55, %c0_56] : memref<1x2x2x128xf32, #tpu.memory_space<vmem>>, vector<1x1x2x128xf32>
    %66 = vector.shape_cast %65 : vector<1x1x2x128xf32> to vector<2x128xf32>
    %67 = vector.shape_cast %61 : vector<2x128xf32> to vector<1x1x2x128xf32>
    tpu.vector_store %arg4[%c0_53, %c1_54, %c0_55, %c0_56], %67 {strides = array<i32>} : memref<1x2x2x128xf32, #tpu.memory_space<vmem>>, vector<1x1x2x128xf32>,
    %cst_57 = arith.constant 0.13333334 : f32
    %68 = vector.broadcast %cst_57 : f32 to vector<2x128xf32>
    %69 = arith.mulf %60, %68 : vector<2x128xf32>
    %cst_58 = arith.constant 1.000000e+00 : f32
    %70 = vector.broadcast %cst_58 : f32 to vector<2x128xf32>
    %71 = arith.subf %69, %70 : vector<2x128xf32>
    %c0_59 = arith.constant 0 : index
    %c0_60 = arith.constant 0 : index
    %c0_61 = arith.constant 0 : index
    %c0_62 = arith.constant 0 : index
    %72 = vector.load %arg5[%c0_59, %c0_60, %c0_61, %c0_62] : memref<1x2x2x128xf32, #tpu.memory_space<vmem>>, vector<1x1x2x128xf32>
    %73 = vector.shape_cast %72 : vector<1x1x2x128xf32> to vector<2x128xf32>
    %74 = vector.shape_cast %71 : vector<2x128xf32> to vector<1x1x2x128xf32>
    tpu.vector_store %arg5[%c0_59, %c0_60, %c0_61, %c0_62], %74 {strides = array<i32>} : memref<1x2x2x128xf32, #tpu.memory_space<vmem>>, vector<1x1x2x128xf32>,
    %cst_63 = arith.constant 0.13333334 : f32
    %75 = vector.broadcast %cst_63 : f32 to vector<2x128xf32>
    %76 = arith.mulf %61, %75 : vector<2x128xf32>
    %cst_64 = arith.constant 1.000000e+00 : f32
    %77 = vector.broadcast %cst_64 : f32 to vector<2x128xf32>
    %78 = arith.subf %76, %77 : vector<2x128xf32>
    %c0_65 = arith.constant 0 : index
    %c1_66 = arith.constant 1 : index
    %c0_67 = arith.constant 0 : index
    %c0_68 = arith.constant 0 : index
    %79 = vector.load %arg5[%c0_65, %c1_66, %c0_67, %c0_68] : memref<1x2x2x128xf32, #tpu.memory_space<vmem>>, vector<1x1x2x128xf32>
    %80 = vector.shape_cast %79 : vector<1x1x2x128xf32> to vector<2x128xf32>
    %81 = vector.shape_cast %78 : vector<2x128xf32> to vector<1x1x2x128xf32>
    tpu.vector_store %arg5[%c0_65, %c1_66, %c0_67, %c0_68], %81 {strides = array<i32>} : memref<1x2x2x128xf32, #tpu.memory_space<vmem>>, vector<1x1x2x128xf32>,
    return
  }
  func.func @transform_0(%arg0: i32, %arg1: i32) -> (i32, i32, i32) {
    %c0_i32 = arith.constant 0 : i32
    %c0_i32_0 = arith.constant 0 : i32
    %c0_i32_1 = arith.constant 0 : i32
    return %arg0, %c0_i32, %c0_i32_0 : i32, i32, i32
  }
  func.func @transform_1(%arg0: i32, %arg1: i32) -> (i32, i32, i32, i32) {
    %c0_i32 = arith.constant 0 : i32
    %c0_i32_0 = arith.constant 0 : i32
    %c0_i32_1 = arith.constant 0 : i32
    return %arg0, %c0_i32, %arg1, %c0_i32_0 : i32, i32, i32, i32
  }
  func.func @transform_2(%arg0: i32, %arg1: i32) -> (i32, i32, i32, i32) {
    %c0_i32 = arith.constant 0 : i32
    %c0_i32_0 = arith.constant 0 : i32
    %c0_i32_1 = arith.constant 0 : i32
    return %arg0, %c0_i32, %arg1, %c0_i32_0 : i32, i32, i32, i32
  }
  func.func @transform_3(%arg0: i32, %arg1: i32) -> (i32, i32, i32, i32) {
    %c0_i32 = arith.constant 0 : i32
    %c0_i32_0 = arith.constant 0 : i32
    %c0_i32_1 = arith.constant 0 : i32
    return %arg0, %c0_i32, %arg1, %c0_i32_0 : i32, i32, i32, i32
  }
}

</mosaic_0001>

<bundles_post_ra>
// kernel: tpu_custom_call.1
= control target key start
LH: loop header
LB: loop body
LE: loop exit
PB: predicated region body
PF: predicated region fallthrough
CT: control target
= control target key end

     0   :  { %9 = vsyncpa [#allocation4], 0  ;;  %s982_s0 = inlined_call_operand.vmem [shape: f32[2,3,4], index: 0, kind: input, shape index: {}]   ;;  %s983_s1 = inlined_call_operand.vmem [shape: f32[2,4,2,128], index: 1, kind: input, shape index: {}]   ;;  %s984_s2 = inlined_call_operand.hbm [shape: f32[2,2,2,128], index: 2, kind: output, shape index: {0}]   ;;  %s985_s3 = inlined_call_operand.hbm [shape: f32[2,2,2,128], index: 3, kind: output, shape index: {1}]  }
   0x1   :  { %11 = vsyncpa [#allocation4 + $0x1], 0 }
   0x2   :  { %12 = vsyncpa [#allocation3], 0 }
   0x3   :  { %14 = vsyncpa [#allocation3 + $0x1], 0 }
   0x4   :  { %15 = vsyncpa [#allocation7], 0 }
   0x5   :  { %17 = vsyncpa [#allocation7 + $0x1], 0  ;;  %s763_s12 = smov 0   ;;  %s765_s13 = smov 0  }
   0x6   :  { %s767_s14 = smov 0   ;;  %s769_s15 = smov 0  }
   0x7   :  { %s771_s16 = smov 0   ;;  %s773_s17 = smov 0  }
   0x8 LB: > { %s486_s18 = sadd.s32 4294967295, %s727_s17   ;;  %s487_s19 = sadd.s32 4294967294, %s727_s17   ;;  %s727_s17 = sphi %s773_s17, %s23_s17   ;;  %s723_s16 = sphi %s771_s16, %s996_s16   ;;  %s719_s15 = sphi %s769_s15, %s995_s15   ;;  %s715_s14 = sphi %s767_s14, %s994_s14   ;;  %s711_s13 = sphi %s765_s13, %s993_s13   ;;  %s707_s12 = sphi %s763_s12, %s992_s12  }
   0x9   : > { %s35_s20 = sadd.s32 1, %s723_s16  ;;  %s42_s21 = sadd.s32 1, %s715_s14 }
   0xa   : > { %p37_p0 = scmp.ge.s32.totalorder %s35_s20, 2  ;;  %p49_p1 = scmp.ne.s32.totalorder %s715_s14, %s711_s13 }
   0xb   : > { %p50_p2 = scmp.eq.s32.totalorder %s727_s17, 0  ;;  %p55_p3 = scmp.ne.s32.totalorder %s711_s13, %s707_s12 }
   0xc   : > { %s998_s20 = smov (%p37_p0, %s35_s20), 0  ;;  %p56_p5 = scmp.eq.s32.totalorder %s486_s18, 0 }
   0xd   : > { %p804_p4 = por %p50_p2, %p49_p1  ;;  %s39_s23 = ssub.s32 %s723_s16, %s998_s20 }
   0xe   : > { %p109_p6 = scmp.eq.s32.totalorder %s486_s18, 1  ;;  %p40_p7 = scmp.eq.s32.totalorder %s39_s23, 0 }
   0xf   : > { %p810_p8 = por %p56_p5, %p55_p3  ;;  %p115_p10 = scmp.eq.s32.totalorder %s487_s19, 1 }
  0x10   : > { %p814_p9 = por %p109_p6, %p49_p1  ;;  %p534_p13 = scmp.lt.s32.totalorder %s727_s17, 2 }
  0x11   : > { %s819_s26 = scalar_select %p40_p7, %s715_s14, %s42_s21  }
  0x12   : > { %p821_p11 = por %p115_p10, %p55_p3  ;;  %s163_s28 = sand.u32 1, %s715_s14  }
  0x13   : > { %s490_s29 = sshll.u32 %s163_s28, 9  ;;  %s491_s30 = sshll.u32 %s723_s16, 2 }
  0x14   : > { %s172_s6 = scalar_lea.vmem %s982_s0, %s491_s30  ;;  %p834_p0 = pnand %p534_p13, %p804_p4 }
  0x15   : > { %s174_s8 = sshll.u32 %s172_s6, 4  ;;  %p492_p1 = scmp.ge.s32.totalorder %s727_s17, 1  ;;  %s175_s8 = int_to_ptr.vmem [resolvable:$true] %s174_s8 }
  0x16   : > { %s167_s9 = scalar_lea.smem [#allocation2], %s490_s29  ;;  %s164_s10 = scalar_lea.sflag [#allocation4], %s163_s28 }
  0x17   : > { %s598_s11 = scalar_lea.vmem %s175_s8, 64  ;;  %p600_p3 = pneg %p834_p0 }
  0x18   : > { %p599_p2 = scmp.ne.s32.totalorder %s175_s8, %s598_s11  ;;  %s603_s21 = sshll.u32 %s982_s0, 4  ;;  %s604_s21 = int_to_ptr.vmem [resolvable:$false] %s603_s21 }
  0x19   : > { %s605_s22 = scalar_lea.vmem %s604_s21, 128  ;;  %p606_p4 = scmp.lt.s32.totalorder %s175_s8, %s604_s21 }
  0x1a   : > { %p601_p5 = pnand %p600_p3, %p599_p2  ;;  %p607_p7 = scmp.lt.s32.totalorder %s605_s22, %s598_s11 }
  0x1c   : > { %p602_p6 = pneg %p601_p5  ;;  %p608_p10 = por %p607_p7, %p606_p4 }
  0x1e   : > { %p609_p13 = pnand %p608_p10, %p602_p6 }
  0x20   : > { %612 = shalt.err (!%p609_p13)
}
  0x21   : > { %526 = dma.vmem_to_smem (!%p834_p0), %s175_s8, 64, %s167_s9, %s164_s10  }
  0x22   : > { %p190_p12 = scmp.lt.s32.totalorder %s727_s17, 3 }
  0x24   : > { %p191_p2 = pnand %p492_p1, %p190_p12 }
  0x25   : > { %s850_s23 = sand.u32 (!%p191_p2), 1, %s711_s13  }
  0x26   : > { %194 = sbr.rel (%p191_p2) target bundleno = 126 (0x7e), region = 28  ;;  %s493_s28 = sshll.u32 (!%p191_p2), %s850_s23, 9 }
  0x27   : > { %s197_s29 = scalar_lea.sflag (!%p191_p2), [#allocation4], %s850_s23  ;;  %s854_s30 = scalar_lea.smem (!%p191_p2), [#allocation2], %s493_s28 }
  0x2d   : > { %694 = dma.done.wait (%p810_p8), %s197_s29, 64  }
  0x2e   : > { %696 = vsyncadd (%p810_p8), %s197_s29, 4294967232 }
  0x2f   : > { %205 = sfence }
  0x30   : > { %p237_p12 = scmp.lt.s32.totalorder %s719_s15, 1  ;;  %s729_s9 = smov 256  }
  0x31   : > { %s282_s10 = sld [smem:[%s854_s30 + %s729_s9]]  ;;  %s730_s11 = smov 257  }
  0x32   : > { %s238_s4 = scalar_select %p237_p12, %s719_s15, 1 }
  0x33   : > { %s285_s24 = sld [smem:[%s854_s30 + %s730_s11]]  ;;  %s731_s18 = smov 258  }
  0x34   : > { %s514_s5 = sshll.u32 %s238_s4, 3  ;;  %s289_s19 = sld [smem:[%s854_s30 + %s731_s18]] }
  0x35   : > { %s244_s8 = scalar_lea.vmem %s983_s1, %s514_s5  ;;  %s732_s21 = smov 259  }
  0x36   : > { %v245_v0 = vld [vmem:[%s244_s8] sm:$0x3]  ;;  %s293_s22 = sld [smem:[%s854_s30 + %s732_s21]]  ;;  %v498_v1 = vld [vmem:[%s244_s8 + $0x2] sm:$0x3]  ;;  %v499_v2 = vld [vmem:[%s244_s8 + $0x4] sm:$0x3] }
  0x37   : > { %v283_v3 = vstv %s282_s10  ;;  %v500_v5 = vld [vmem:[%s244_s8 + $0x6] sm:$0x3]  ;;  %s869_s29 = sld [smem:[#allocation2 + %s493_s28]]  ;;  %s733_s4 = smov 1  }
  0x38   : > { %v284_v4 = vmul.f32 %v283_v3, %v245_v0  ;;  %s255_s5 = sld [smem:[%s854_s30 + %s733_s4]]  ;;  %s734_s6 = smov 128  }
  0x39   : > { %v286_v6 = vstv %s285_s24  ;;  %s267_s7 = sld [smem:[%s854_s30 + %s734_s6]]  ;;  %s735_s9 = smov 129  }
  0x3a   : > { %v290_v7 = vstv %s289_s19  ;;  %v287_v8 = vmul.f32 %v498_v1, %v286_v6  ;;  %s270_s11 = sld [smem:[%s854_s30 + %s735_s9]]  ;;  %s736_s8 = smov 2  }
  0x3b   : > { %v291_v9 = vmul.f32 %v499_v2, %v290_v7  ;;  %s259_s28 = sld [smem:[%s854_s30 + %s736_s8]]  ;;  %s737_s10 = smov 130  }
  0x3c   : > { %v294_v10 = vstv %s293_s22  ;;  %v288_v11 = vadd.f32 %v287_v8, %v284_v4  ;;  %s274_s18 = sld [smem:[%s854_s30 + %s737_s10]]  ;;  %s738_s24 = smov 3  }
  0x3d   : > { %v295_v12 = vmul.f32 %v500_v5, %v294_v10  ;;  %v253_v15 = vstv %s869_s29  ;;  %s263_s19 = sld [smem:[%s854_s30 + %s738_s24]]  ;;  %s739_s21 = smov 131  }
  0x3e   : > { %v292_v13 = vadd.f32 %v291_v9, %v288_v11  ;;  %v256_v16 = vstv %s255_s5  ;;  %s278_s22 = sld [smem:[%s854_s30 + %s739_s21]]  ;;  %v254_v20 = vmul.f32 %v253_v15, %v245_v0  ;;  %s494_s29 = sshll.u32 %s850_s23, 2 }
  0x3f   : > { %v268_v18 = vstv %s267_s7  ;;  %v257_v21 = vmul.f32 %v498_v1, %v256_v16  ;;  %s229_s30 = scalar_lea.vmem [#allocation5], %s494_s29  ;;  %s515_s5 = sshll.u32 %s719_s15, 6 }
  0x40   : > { %v296_v14 = vadd.f32 %v295_v12, %v292_v13  ;;  %v271_v19 = vstv %s270_s11  ;;  %v269_v22 = vmul.f32 %v268_v18, %v245_v0  ;;  %s334_s4 = sshll.u32 %s229_s30, 4  ;;  %s884_s6 = scalar_lea.vmem [#allocation6], %s494_s29  ;;  %s882_s4 = int_to_ptr.vmem [resolvable:$true] %s334_s4 }
  0x41   : > { %v272_v23 = vmul.f32 %v498_v1, %v271_v19  ;;  %v260_v24 = vstv %s259_s28  ;;  %v258_v26 = vadd.f32 %v257_v21, %v254_v20  ;;  %s351_s7 = sshll.u32 %s884_s6, 4  ;;  %s892_s28 = scalar_lea.hbm %s984_s2, %s515_s5  ;;  %s894_s7 = int_to_ptr.vmem [resolvable:$true] %s351_s7 }
  0x42   : > { %v297_v17 = vadd.f32 1e-07, %v296_v14  ;;  %v275_v25 = vstv %s274_s18  ;;  %v261_v27 = vmul.f32 %v499_v2, %v260_v24  ;;  %s315_s10 = scalar_lea.sflag [#allocation3], %s850_s23  ;;  %s613_s18 = scalar_lea.vmem %s882_s4, 64 }
  0x43   : > { %v273_v28 = vadd.f32 %v272_v23, %v269_v22  ;;  %v276_v29 = vmul.f32 %v499_v2, %v275_v25  ;;  %v264_v30 = vstv %s263_s19  ;;  %p614_p8 = scmp.ne.s32.totalorder %s882_s4, %s613_s18  ;;  %s740_s24 = smov [#allocation5]  }
  0x44   : > { %596 = vrcp.f32 %v297_v17  ;;  %v279_v31 = vstv %s278_s22  ;;  %v262_v32 = vadd.f32 %v261_v27, %v258_v26  ;;  %v265_v33 = vmul.f32 %v500_v5, %v264_v30  ;;  %s617_s19 = sshll.u32 %s740_s24, 4  ;;  %s618_s19 = int_to_ptr.vmem [resolvable:$false] %s617_s19 }
  0x45   : > { %v277_v34 = vadd.f32 %v276_v29, %v273_v28  ;;  %v280_v35 = vmul.f32 %v500_v5, %v279_v31  ;;  %p615_p0 = pnand %p614_p8, %p814_p9  ;;  %s619_s21 = scalar_lea.vmem %s618_s19, 128 }
  0x46   : > { %v266_v38 = vadd.f32 %v265_v33, %v262_v32  ;;  %p620_p3 = scmp.lt.s32.totalorder %s882_s4, %s618_s19  ;;  %p621_p5 = scmp.lt.s32.totalorder %s619_s21, %s613_s18 }
  0x47   : > { %v281_v40 = vadd.f32 %v280_v35, %v277_v34  ;;  %p616_p1 = pneg %p615_p0 }
  0x48   : > { %p622_p6 = por %p621_p5, %p620_p3 }
  0x4a   : > { %p623_p4 = pnand %p622_p6, %p616_p1 }
  0x4e   : > { %v597_v36 = vpop.eup %596 }
  0x4f   : > { %v299_v37 = vmul.f32 %v597_v36, %v297_v17 }
  0x51   : > { %v300_v39 = vsub.f32 2.0, %v299_v37 }
  0x53   : > { %v301_v41 = vmul.f32 %v597_v36, %v300_v39 }
  0x55   : > { %v302_v42 = vmul.f32 %v301_v41, %v266_v38  ;;  %v303_v43 = vmul.f32 %v301_v41, %v281_v40 }
  0x57   : > { %304 = vst [vmem:[%s229_s30] sm:$0x3] %v302_v42  ;;  %502 = vst [vmem:[%s229_s30 + $0x2] sm:$0x3] %v303_v43  ;;  %v307_v44 = vmul.f32 0.13333334, %v302_v42 }
  0x58   : > { %v310_v45 = vmul.f32 0.13333334, %v303_v43 }
  0x59   : > { %626 = shalt.err (!%p623_p4)
}
  0x5a   : > { %s627_s22 = scalar_lea.hbm %s892_s28, 64  ;;  %s631_s9 = scalar_lea.hbm %s984_s2, 128 }
  0x5b   : > { %p628_p7 = scmp.ne.s32.totalorder %s892_s28, %s627_s22  ;;  %p632_p2 = scmp.lt.u32.totalorder %s892_s28, %s984_s2 }
  0x5c   : > { %p633_p12 = scmp.lt.u32.totalorder %s631_s9, %s627_s22  ;;  %p635_p0 = scmp.lt.u32.totalorder %s627_s22, %s892_s28 }
  0x5d   : > { %p629_p10 = pnand %p628_p7, %p814_p9 }
  0x5e   : > { %p634_p8 = por %p633_p12, %p632_p2 }
  0x5f   : > { %p630_p13 = pneg %p629_p10 }
  0x60   : > { %p636_p1 = por %p635_p0, %p634_p8 }
  0x62   : > { %p637_p3 = pnand %p636_p1, %p630_p13 }
  0x64   : > { %640 = shalt.err (!%p637_p3)
}
  0x65   : > { %s741_s18 = smov 32   ;;  %v503_v46 = vadd.f32 -1.0, %v307_v44  ;;  %v504_v47 = vadd.f32 -1.0, %v310_v45  ;;  %s928_s22 = scalar_lea.hbm %s985_s3, %s515_s5 }
  0x66   : > { %519 = dma.vmem_to_hbm [thread:$0]  (%p814_p9), %s882_s4, 64, %s892_s28, %s315_s10, %s741_s18, %s741_s18, %s736_s8  }
  0x67   : > { %309 = vst [vmem:[%s884_s6] sm:$0x3] %v503_v46  ;;  %505 = vst [vmem:[%s884_s6 + $0x2] sm:$0x3] %v504_v47  ;;  %s320_s29 = scalar_lea.sflag [#allocation7], %s850_s23  ;;  %s641_s30 = scalar_lea.vmem %s894_s7, 64 }
  0x68   : > { %p642_p5 = scmp.ne.s32.totalorder %s894_s7, %s641_s30  ;;  %s742_s9 = smov [#allocation6]  }
  0x69   : > { %s645_s11 = sshll.u32 %s742_s9, 4  ;;  %s646_s11 = int_to_ptr.vmem [resolvable:$false] %s645_s11 }
  0x6a   : > { %p643_p6 = pnand %p642_p5, %p814_p9  ;;  %s647_s4 = scalar_lea.vmem %s646_s11, 128 }
  0x6b   : > { %p648_p7 = scmp.lt.s32.totalorder %s894_s7, %s646_s11  ;;  %p649_p10 = scmp.lt.s32.totalorder %s647_s4, %s641_s30 }
  0x6c   : > { %p644_p4 = pneg %p643_p6 }
  0x6d   : > { %p650_p13 = por %p649_p10, %p648_p7 }
  0x6f   : > { %p651_p2 = pnand %p650_p13, %p644_p4 }
  0x71   : > { %654 = shalt.err (!%p651_p2)
}
  0x72   : > { %s655_s15 = scalar_lea.hbm %s928_s22, 64  ;;  %s659_s28 = scalar_lea.hbm %s985_s3, 128 }
  0x73   : > { %p656_p12 = scmp.ne.s32.totalorder %s928_s22, %s655_s15  ;;  %p660_p1 = scmp.lt.u32.totalorder %s928_s22, %s985_s3 }
  0x74   : > { %p661_p3 = scmp.lt.u32.totalorder %s659_s28, %s655_s15  ;;  %p663_p6 = scmp.lt.u32.totalorder %s655_s15, %s928_s22 }
  0x75   : > { %p657_p8 = pnand %p656_p12, %p814_p9 }
  0x76   : > { %p662_p5 = por %p661_p3, %p660_p1 }
  0x77   : > { %p658_p0 = pneg %p657_p8 }
  0x78   : > { %p664_p4 = por %p663_p6, %p662_p5 }
  0x7a   : > { %p665_p7 = pnand %p664_p4, %p658_p0 }
  0x7c   : > { %668 = shalt.err (!%p665_p7)
}
  0x7d   : > { %520 = dma.vmem_to_hbm [thread:$0]  (%p814_p9), %s894_s7, 64, %s928_s22, %s320_s29, %s741_s18, %s741_s18, %s736_s8  }
  0x7e PF: > { %s366_s19 = sand.u32 1, %s707_s12   ;;  %p991_p10 = scmp.ge.s32.totalorder %s727_s17, 2 }
  0x7f   : > { %s367_s21 = scalar_lea.sflag [#allocation3], %s366_s19 }
  0x80   : > { %p528_p13 = pnand %p991_p10, %p821_p11 }
  0x82   : > { %698 = dma.done.wait (!%p528_p13), %s367_s21, 64  }
  0x83   : > { %700 = vsyncadd (!%p528_p13), %s367_s21, 4294967232  ;;  %s376_s25 = scalar_lea.sflag [#allocation7], %s366_s19 }
  0x84   : > { %702 = dma.done.wait (!%p528_p13), %s376_s25, 64  }
  0x85   : > { %704 = vsyncadd (!%p528_p13), %s376_s25, 4294967232  ;;  %s23_s17 = sadd.s32 1, %s727_s17   ;;  %s992_s12 = smov %s711_s13 }
  0x86   : > { %p20_p2 = scmp.ge.s32.totalorder %s23_s17, 4   ;;  %s993_s13 = smov %s715_s14 }
  0x87   : > { %s994_s14 = smov %s819_s26  ;;  %s995_s15 = smov %s723_s16 }
  0x88   : > { %s996_s16 = smov %s998_s20  ;;  %22 = sbr.rel (!%p20_p2) target bundleno = 8 (0x8), region = 98 }
  0x8f   :  { %381 = vsyncpa [#allocation3], 1 }
  0x90   :  { %383 = vsyncpa [#allocation3 + $0x1], 1 }
  0x91   :  { %384 = vsyncpa [#allocation7], 1 }
  0x92   :  { %386 = vsyncpa [#allocation7 + $0x1], 1 }
  0x93   :  { %387 = vsyncpa [#allocation4], 1 }
  0x94   :  { %389 = vsyncpa [#allocation4 + $0x1], 1 }

</bundles_post_ra>
